<compile_context>
chip_gen: v7x
topology: tpu7x:2x2x1
jax: 0.10.0
libtpu: 0.0.40
codegen_flags: <defaults>
</compile_context>

<pallas_src>
import functools
import operator

import jax
import jax.numpy as jnp
from jax.experimental import pallas as pl
from jax.experimental.pallas import tpu as pltpu

H1 = 400          # logical hidden sizes (PyTorch module)
H2 = 300
H1P = 512         # lane-aligned padded sizes (zero padding -> exact results)
H2P = 384


def _pick_tb(batch):
    """Generation-aware batch tile.

    Per-grid-step pipeline overhead is ~0.35us; at tb=256 the MXU work per step
    (~0.19us on v6e/v7x) is smaller than that, so use big tiles:
      v6e/v7x (918/996 TF/s, 32 MiB scoped VMEM default): up to 2048 rows/step.
      v5e     (197 TF/s, 16 MiB scoped VMEM default):     up to 1024 rows/step.
    For batches that fit in one tile on a dual-TC part, split into two balanced
    steps when large enough so the "parallel" axis can shard across cores.
    """
    try:
        kind = jax.devices()[0].device_kind.lower()
    except Exception:  # pragma: no cover - defensive
        kind = ""
    is_v5 = "v5" in kind
    tb_max = 1024 if is_v5 else 2048
    if batch <= tb_max:
        if (not is_v5) and batch >= 1024 and batch % 16 == 0:
            return batch // 2          # two balanced steps for v7x's 2 TCs
        return batch                   # single full-extent block (no padding)
    return tb_max


def _critic_kernel(x_ref, u_ref,
                   w1_ref, b1_ref,
                   w2x_ref, w2u_ref, b2_ref,
                   w3_ref, b3_ref,
                   out_ref):
    # ---- Layer 1: relu(x @ W1 + b1); bf16 MXU operands, f32 accumulation ----
    x_bf = x_ref[...].astype(jnp.bfloat16)            # cast in-kernel, not in wrapper
    h1 = jnp.dot(x_bf, w1_ref[...], preferred_element_type=jnp.float32)
    h1 = jnp.maximum(h1 + b1_ref[...], 0.0).astype(jnp.bfloat16)   # [TB, 512] bf16

    # ---- Layer 2: relu(cat([h1, u]) @ W2 + b2) == relu(h1@W2x + u@W2u + b2) ----
    acc2 = jnp.dot(h1, w2x_ref[...], preferred_element_type=jnp.float32)
    acc2 = acc2 + b2_ref[...]                          # bias added once, f32
    ad = u_ref.shape[1]
    if ad <= 8:
        # Tiny static K: VPU outer-product accumulate instead of a degenerate
        # contraction-depth-ad MXU pass.
        u_blk = u_ref[...]                             # [TB, ad] f32
        w2u = w2u_ref[...]                             # [ad, 384] f32
        for a in range(ad):
            acc2 = acc2 + u_blk[:, a:a + 1] * w2u[a:a + 1, :]
    else:
        acc2 = acc2 + jnp.dot(u_ref[...], w2u_ref[...],
                              preferred_element_type=jnp.float32)
    h2 = jnp.maximum(acc2, 0.0)                        # [TB, 384] f32

    # ---- Layer 3: q = h2 @ w3 + b3 as VPU multiply + XLU lane-reduce (f32) ----
    # (N=1 output: MXU would be <1/2 filled; VPU/XLU have slack here.)
    q = jnp.sum(h2 * w3_ref[...], axis=-1, keepdims=True) + b3_ref[0, 0]
    out_ref[...] = q                                   # [TB, 1] f32, stored directly


def critic_dense_forward(x, u, params, *, tb=None):
    """x: [B, state_flat] f32, u: [B, action_dim] f32 -> q: [B, 1] f32."""
    w1, b1, w2x, w2u, b2, w3, b3 = params
    B, sf = x.shape
    ad = u.shape[1]
    if tb is None:
        tb = _pick_tb(B)
    nt = pl.cdiv(B, tb)   # if B % tb != 0 the last block's surplus rows are
                          # computed on garbage and clipped on writeback (rows
                          # are independent, so valid rows are unaffected).

    batch_map = lambda i: (i, 0)     # activation/output tiles over the batch
    const_map = lambda i: (0, 0)     # weights/biases: same block every step (resident)

    flops = 2 * B * (sf * H1P + H1P * H2P + ad * H2P + H2P)
    bytes_accessed = (
        (sf * H1P + H1P * H2P) * 2                   # bf16 matmul weights
        + (H1P + H2P + ad * H2P + H2P + 1) * 4       # f32 biases, w2u, w3 row
        + B * (sf * 4 + ad * 4 + 4))                 # f32 activations in / q out

    return pl.pallas_call(
        _critic_kernel,
        out_shape=jax.ShapeDtypeStruct((B, 1), jnp.float32),
        grid=(nt,),
        in_specs=[
            pl.BlockSpec((tb, sf), batch_map),       # x   (f32; bf16 cast in-kernel)
            pl.BlockSpec((tb, ad), batch_map),       # u   (f32)
            pl.BlockSpec((sf, H1P), const_map),      # w1  (bf16)
            pl.BlockSpec((1, H1P), const_map),       # b1  (f32)
            pl.BlockSpec((H1P, H2P), const_map),     # w2x (bf16)
            pl.BlockSpec((ad, H2P), const_map),      # w2u (f32, VPU path)
            pl.BlockSpec((1, H2P), const_map),       # b2  (f32)
            pl.BlockSpec((1, H2P), const_map),       # w3 row (f32)
            pl.BlockSpec((1, 1), const_map),         # b3  (f32)
        ],
        out_specs=pl.BlockSpec((tb, 1), batch_map),
        compiler_params=pltpu.CompilerParams(
            dimension_semantics=("parallel",),
            vmem_limit_bytes=32 * 1024 * 1024),
        cost_estimate=pl.CostEstimate(
            flops=flops, transcendentals=0, bytes_accessed=bytes_accessed),
    )(x, u.astype(jnp.float32), w1, b1, w2x, w2u, b2, w3, b3)


def init_params(key, state_flat, action_dim):
    """PyTorch-Linear-style uniform init, zero-padded to lane-aligned shapes.

    Matmul weights stored [in, out]; big weights in bf16, biases / w2u / w3 in
    f32. Zero padding is exact through ReLU and the final reduce, so results
    match the unpadded network.
    """
    ks = jax.random.split(key, 6)

    def unif(k, shape, fan_in):
        bound = 1.0 / jnp.sqrt(jnp.float32(fan_in))
        return jax.random.uniform(k, shape, jnp.float32, -bound, bound)

    w1 = unif(ks[0], (state_flat, H1), state_flat)
    b1 = unif(ks[1], (1, H1), state_flat)
    w2_full = unif(ks[2], (H1 + action_dim, H2), H1 + action_dim)
    b2 = unif(ks[3], (1, H2), H1 + action_dim)
    w3 = unif(ks[4], (H2, 1), H2)
    b3 = unif(ks[5], (1, 1), H2)

    w2x = w2_full[:H1]           # acts on h1 (first 400 rows of the concat weight)
    w2u = w2_full[H1:]           # acts on u  (last action_dim rows)

    def pad_to(a, shape):
        return jnp.pad(a, [(0, t - s) for s, t in zip(a.shape, shape)])

    w1p = pad_to(w1, (state_flat, H1P)).astype(jnp.bfloat16)
    b1p = pad_to(b1, (1, H1P))
    w2xp = pad_to(w2x, (H1P, H2P)).astype(jnp.bfloat16)
    w2up = pad_to(w2u, (action_dim, H2P))             # f32, VPU outer-product path
    b2p = pad_to(b2, (1, H2P))
    w3p = pad_to(w3.T, (1, H2P))                      # f32 row vector, VPU layer 3
    b3p = b3                                          # f32 scalar (1, 1)
    return (w1p, b1p, w2xp, w2up, b2p, w3p, b3p)


def reference_forward(x, u, params):
    """Pure-JAX reference with the same bf16-operand / f32-accumulate precision."""
    w1, b1, w2x, w2u, b2, w3, b3 = params
    xb = x.astype(jnp.bfloat16)
    h1 = jax.nn.relu(jnp.dot(xb, w1, preferred_element_type=jnp.float32) + b1)
    h2 = jax.nn.relu(
        jnp.dot(h1.astype(jnp.bfloat16), w2x, preferred_element_type=jnp.float32)
        + jnp.dot(u.astype(jnp.float32), w2u) + b2)
    q = jnp.sum(h2 * w3, axis=-1, keepdims=True) + b3
    return q


if __name__ == "__main__":
    # small synthetic problem: state_dim = (3, 8, 8) -> 192 flat, action_dim = 2
    state_dim = (3, 8, 8)
    state_flat = functools.reduce(operator.mul, state_dim, 1)
    action_dim = 2
    batch = 2

    key = jax.random.PRNGKey(0)
    k_x, k_u, k_p = jax.random.split(key, 3)

    # forward() expects an already-flattened state vector (Linear on prod(state_dim))
    x = jax.random.normal(k_x, (batch, state_flat), jnp.float32)
    u = jax.random.normal(k_u, (batch, action_dim), jnp.float32)
    params = init_params(k_p, state_flat, action_dim)

    out = critic_dense_forward(x, u, params)
    out = jax.block_until_ready(out)

    ref = reference_forward(x, u, params)
    assert out.shape == (batch, 1), out.shape
    assert jnp.allclose(out, ref, atol=1e-3, rtol=1e-3), (out, ref)

    print("KERNEL_OK")
</pallas_src>

<mosaic_0001>
module attributes {stable_mosaic.version = 11 : i64} {
  func.func @_critic_kernel(%arg0: i32, %arg1: memref<2x192xf32, #tpu.memory_space<vmem>>, %arg2: memref<2x2xf32, #tpu.memory_space<vmem>>, %arg3: memref<192x512xbf16, #tpu.memory_space<vmem>>, %arg4: memref<1x512xf32, #tpu.memory_space<vmem>>, %arg5: memref<512x384xbf16, #tpu.memory_space<vmem>>, %arg6: memref<2x384xf32, #tpu.memory_space<vmem>>, %arg7: memref<1x384xf32, #tpu.memory_space<vmem>>, %arg8: memref<1x384xf32, #tpu.memory_space<vmem>>, %arg9: memref<1x1xf32, #tpu.memory_space<vmem>>, %arg10: memref<2x1xf32, #tpu.memory_space<vmem>>) attributes {dimension_semantics = [#tpu.dimension_semantics<parallel>], iteration_bounds = array<i64: 1>, scalar_prefetch = 0 : i64, scratch_operands = 0 : i64, tpu.core_type = #tpu.core_type<tc>, window_params = [{transform_indices = @transform_0, window_bounds = array<i64: 2, 192>}, {transform_indices = @transform_1, window_bounds = array<i64: 2, 2>}, {pipeline_mode = #tpu.pipeline_mode<synchronous>, transform_indices = @transform_2, window_bounds = array<i64: 192, 512>}, {pipeline_mode = #tpu.pipeline_mode<synchronous>, transform_indices = @transform_3, window_bounds = array<i64: 1, 512>}, {pipeline_mode = #tpu.pipeline_mode<synchronous>, transform_indices = @transform_4, window_bounds = array<i64: 512, 384>}, {pipeline_mode = #tpu.pipeline_mode<synchronous>, transform_indices = @transform_5, window_bounds = array<i64: 2, 384>}, {pipeline_mode = #tpu.pipeline_mode<synchronous>, transform_indices = @transform_6, window_bounds = array<i64: 1, 384>}, {pipeline_mode = #tpu.pipeline_mode<synchronous>, transform_indices = @transform_7, window_bounds = array<i64: 1, 384>}, {pipeline_mode = #tpu.pipeline_mode<synchronous>, transform_indices = @transform_8, window_bounds = array<i64: 1, 1>}, {transform_indices = @transform_9, window_bounds = array<i64: 2, 1>}]} {
    %c0 = arith.constant 0 : index
    %c0_0 = arith.constant 0 : index
    %0 = vector.load %arg1[%c0, %c0_0] : memref<2x192xf32, #tpu.memory_space<vmem>>, vector<2x192xf32>
    %1 = arith.truncf %0 : vector<2x192xf32> to vector<2x192xbf16>
    %c0_1 = arith.constant 0 : index
    %c0_2 = arith.constant 0 : index
    %2 = vector.load %arg3[%c0_1, %c0_2] : memref<192x512xbf16, #tpu.memory_space<vmem>>, vector<192x512xbf16>
    %cst = arith.constant dense<0.000000e+00> : vector<2x512xf32>
    %3 = tpu.matmul %1, %2, %cst {dimension_numbers = #tpu.dot_dimension_numbers<[1], [0], [0], [1], [0, 0, 1, 1], [], []>} : vector<2x192xbf16>, vector<192x512xbf16>, vector<2x512xf32> -> vector<2x512xf32>
    %c0_3 = arith.constant 0 : index
    %c0_4 = arith.constant 0 : index
    %4 = vector.load %arg4[%c0_3, %c0_4] : memref<1x512xf32, #tpu.memory_space<vmem>>, vector<1x512xf32>
    %5 = vector.broadcast %4 : vector<1x512xf32> to vector<2x512xf32>
    %6 = arith.addf %3, %5 : vector<2x512xf32>
    %cst_5 = arith.constant 0.000000e+00 : f32
    %7 = vector.broadcast %cst_5 : f32 to vector<2x512xf32>
    %8 = arith.maximumf %6, %7 : vector<2x512xf32>
    %9 = arith.truncf %8 : vector<2x512xf32> to vector<2x512xbf16>
    %c0_6 = arith.constant 0 : index
    %c0_7 = arith.constant 0 : index
    %10 = vector.load %arg5[%c0_6, %c0_7] : memref<512x384xbf16, #tpu.memory_space<vmem>>, vector<512x384xbf16>
    %cst_8 = arith.constant dense<0.000000e+00> : vector<2x384xf32>
    %11 = tpu.matmul %9, %10, %cst_8 {dimension_numbers = #tpu.dot_dimension_numbers<[1], [0], [0], [1], [0, 0, 1, 1], [], []>} : vector<2x512xbf16>, vector<512x384xbf16>, vector<2x384xf32> -> vector<2x384xf32>
    %c0_9 = arith.constant 0 : index
    %c0_10 = arith.constant 0 : index
    %12 = vector.load %arg7[%c0_9, %c0_10] : memref<1x384xf32, #tpu.memory_space<vmem>>, vector<1x384xf32>
    %13 = vector.broadcast %12 : vector<1x384xf32> to vector<2x384xf32>
    %14 = arith.addf %11, %13 : vector<2x384xf32>
    %c0_11 = arith.constant 0 : index
    %c0_12 = arith.constant 0 : index
    %15 = vector.load %arg2[%c0_11, %c0_12] : memref<2x2xf32, #tpu.memory_space<vmem>>, vector<2x2xf32>
    %c0_13 = arith.constant 0 : index
    %c0_14 = arith.constant 0 : index
    %16 = vector.load %arg6[%c0_13, %c0_14] : memref<2x384xf32, #tpu.memory_space<vmem>>, vector<2x384xf32>
    %17 = vector.extract_strided_slice %15 {offsets = [0, 0], sizes = [2, 1], strides = [1, 1]} : vector<2x2xf32> to vector<2x1xf32>
    %18 = vector.extract_strided_slice %16 {offsets = [0, 0], sizes = [1, 384], strides = [1, 1]} : vector<2x384xf32> to vector<1x384xf32>
    %19 = vector.broadcast %17 : vector<2x1xf32> to vector<2x384xf32>
    %20 = vector.broadcast %18 : vector<1x384xf32> to vector<2x384xf32>
    %21 = arith.mulf %19, %20 : vector<2x384xf32>
    %22 = arith.addf %14, %21 : vector<2x384xf32>
    %23 = vector.extract_strided_slice %15 {offsets = [0, 1], sizes = [2, 1], strides = [1, 1]} : vector<2x2xf32> to vector<2x1xf32>
    %24 = vector.extract_strided_slice %16 {offsets = [1, 0], sizes = [1, 384], strides = [1, 1]} : vector<2x384xf32> to vector<1x384xf32>
    %25 = vector.broadcast %23 : vector<2x1xf32> to vector<2x384xf32>
    %26 = vector.broadcast %24 : vector<1x384xf32> to vector<2x384xf32>
    %27 = arith.mulf %25, %26 : vector<2x384xf32>
    %28 = arith.addf %22, %27 : vector<2x384xf32>
    %cst_15 = arith.constant 0.000000e+00 : f32
    %29 = vector.broadcast %cst_15 : f32 to vector<2x384xf32>
    %30 = arith.maximumf %28, %29 : vector<2x384xf32>
    %c0_16 = arith.constant 0 : index
    %c0_17 = arith.constant 0 : index
    %31 = vector.load %arg8[%c0_16, %c0_17] : memref<1x384xf32, #tpu.memory_space<vmem>>, vector<1x384xf32>
    %32 = vector.broadcast %31 : vector<1x384xf32> to vector<2x384xf32>
    %33 = arith.mulf %30, %32 : vector<2x384xf32>
    %cst_18 = arith.constant dense<0.000000e+00> : vector<2xf32>
    %34 = vector.multi_reduction <add>, %33, %cst_18 [1] : vector<2x384xf32> to vector<2xf32>
    %35 = vector.shape_cast %34 : vector<2xf32> to vector<2x1xf32>
    %c0_19 = arith.constant 0 : index
    %c0_20 = arith.constant 0 : index
    %36 = vector.load %arg9[%c0_19, %c0_20] : memref<1x1xf32, #tpu.memory_space<vmem>>, vector<1x1xf32>
    %37 = vector.extract %36[0, 0] : f32 from vector<1x1xf32>
    %38 = vector.broadcast %37 : f32 to vector<2x1xf32>
    %39 = arith.addf %35, %38 : vector<2x1xf32>
    %c0_21 = arith.constant 0 : index
    %c0_22 = arith.constant 0 : index
    %40 = vector.load %arg10[%c0_21, %c0_22] : memref<2x1xf32, #tpu.memory_space<vmem>>, vector<2x1xf32>
    tpu.vector_store %arg10[%c0_21, %c0_22], %39 {strides = array<i32>} : memref<2x1xf32, #tpu.memory_space<vmem>>, vector<2x1xf32>,
    return
  }
  func.func @transform_0(%arg0: i32) -> (i32, i32) {
    %c0_i32 = arith.constant 0 : i32
    %c0_i32_0 = arith.constant 0 : i32
    return %arg0, %c0_i32 : i32, i32
  }
  func.func @transform_1(%arg0: i32) -> (i32, i32) {
    %c0_i32 = arith.constant 0 : i32
    %c0_i32_0 = arith.constant 0 : i32
    return %arg0, %c0_i32 : i32, i32
  }
  func.func @transform_2(%arg0: i32) -> (i32, i32) {
    %c0_i32 = arith.constant 0 : i32
    %c0_i32_0 = arith.constant 0 : i32
    %c0_i32_1 = arith.constant 0 : i32
    return %c0_i32, %c0_i32_0 : i32, i32
  }
  func.func @transform_3(%arg0: i32) -> (i32, i32) {
    %c0_i32 = arith.constant 0 : i32
    %c0_i32_0 = arith.constant 0 : i32
    %c0_i32_1 = arith.constant 0 : i32
    return %c0_i32, %c0_i32_0 : i32, i32
  }
  func.func @transform_4(%arg0: i32) -> (i32, i32) {
    %c0_i32 = arith.constant 0 : i32
    %c0_i32_0 = arith.constant 0 : i32
    %c0_i32_1 = arith.constant 0 : i32
    return %c0_i32, %c0_i32_0 : i32, i32
  }
  func.func @transform_5(%arg0: i32) -> (i32, i32) {
    %c0_i32 = arith.constant 0 : i32
    %c0_i32_0 = arith.constant 0 : i32
    %c0_i32_1 = arith.constant 0 : i32
    return %c0_i32, %c0_i32_0 : i32, i32
  }
  func.func @transform_6(%arg0: i32) -> (i32, i32) {
    %c0_i32 = arith.constant 0 : i32
    %c0_i32_0 = arith.constant 0 : i32
    %c0_i32_1 = arith.constant 0 : i32
    return %c0_i32, %c0_i32_0 : i32, i32
  }
  func.func @transform_7(%arg0: i32) -> (i32, i32) {
    %c0_i32 = arith.constant 0 : i32
    %c0_i32_0 = arith.constant 0 : i32
    %c0_i32_1 = arith.constant 0 : i32
    return %c0_i32, %c0_i32_0 : i32, i32
  }
  func.func @transform_8(%arg0: i32) -> (i32, i32) {
    %c0_i32 = arith.constant 0 : i32
    %c0_i32_0 = arith.constant 0 : i32
    %c0_i32_1 = arith.constant 0 : i32
    return %c0_i32, %c0_i32_0 : i32, i32
  }
  func.func @transform_9(%arg0: i32) -> (i32, i32) {
    %c0_i32 = arith.constant 0 : i32
    %c0_i32_0 = arith.constant 0 : i32
    return %arg0, %c0_i32 : i32, i32
  }
}

</mosaic_0001>

<bundles_post_ra>
// kernel: tpu_custom_call.1
= control target key start
LH: loop header
LB: loop body
LE: loop exit
PB: predicated region body
PF: predicated region fallthrough
CT: control target
= control target key end

     0   :  { %s2117_s0 = inlined_call_operand.hbm [shape: f32[2,192], index: 0, kind: input, shape index: {}]   ;;  %s2118_s1 = inlined_call_operand.hbm [shape: f32[2,2], index: 1, kind: input, shape index: {}]   ;;  %s2119_s2 = inlined_call_operand.hbm [shape: bf16[192,512], index: 2, kind: input, shape index: {}]   ;;  %s2120_s3 = inlined_call_operand.vmem [shape: f32[1,512], index: 3, kind: input, shape index: {}]   ;;  %s2121_s4 = inlined_call_operand.hbm [shape: bf16[512,384], index: 4, kind: input, shape index: {}]   ;;  %s2122_s5 = inlined_call_operand.vmem [shape: f32[2,384], index: 5, kind: input, shape index: {}]   ;;  %s2123_s6 = inlined_call_operand.vmem [shape: f32[1,384], index: 6, kind: input, shape index: {}]   ;;  %s2124_s7 = inlined_call_operand.vmem [shape: f32[1,384], index: 7, kind: input, shape index: {}]   ;;  %s2125_s8 = inlined_call_operand.<no memory space> [shape: f32[1,1], index: 8, kind: input, shape index: {}]   ;;  %s2126_s9 = inlined_call_operand.vmem [shape: f32[2,1], index: 9, kind: output, shape index: {}]  }
   0x1   :  { %v14_v0 = vstv %s2125_s8 }
   0x2   :  { %15 = vst [vmem:[#allocation2] sm:$0x1] %v14_v0 }
   0x3   :  { %16 = vsyncpa [#allocation4], 0 }
   0x4   :  { %17 = vsyncpa [#allocation6], 0 }
   0x5   :  { %18 = vsyncpa [#allocation9], 0  ;;  %s1944_s11 = smov [#allocation5]   ;;  %s1945_s13 = smov [#allocation3]  }
   0x6   :  { %s35_s12 = sshll.u32 %s1944_s11, 4  ;;  %s25_s14 = sshll.u32 %s1945_s13, 4  ;;  %s36_s12 = int_to_ptr.vmem [resolvable:$true] %s35_s12  ;;  %s26_s14 = int_to_ptr.vmem [resolvable:$true] %s25_s14 }
   0x7   :  { %s1850_s17 = scalar_lea.hbm %s2118_s1, 32 }
   0x8   :  { %p1851_p0 = scmp.ne.s32.totalorder %s2118_s1, %s1850_s17  ;;  %p1854_p1 = scmp.lt.u32.totalorder %s1850_s17, %s2118_s1 }
   0xa   :  { %p1856_p2 = pnand %p1854_p1, %p1851_p0 }
   0xc   :  { %1859 = shalt.err (!%p1856_p2)
}
   0xd   :  { %s1860_s21 = scalar_lea.vmem %s36_s12, 32  ;;  %p1865_p4 = scmp.lt.s32.totalorder %s36_s12, %s36_s12 }
   0xe   :  { %p1861_p3 = scmp.ne.s32.totalorder %s36_s12, %s1860_s21  ;;  %p1866_p5 = scmp.lt.s32.totalorder %s1860_s21, %s1860_s21 }
  0x10   :  { %p1867_p6 = por %p1866_p5, %p1865_p4 }
  0x12   :  { %p1868_p7 = pnand %p1867_p6, %p1861_p3 }
  0x14   :  { %1871 = shalt.err (!%p1868_p7)
}
  0x15   :  { %38 = dma.hbm_to_vmem [thread:$0]  %s2118_s1, 32, %s36_s12, [#allocation6]  }
  0x16   :  { %s1872_s26 = scalar_lea.hbm %s2117_s0, 64 }
  0x17   :  { %p1873_p8 = scmp.ne.s32.totalorder %s2117_s0, %s1872_s26  ;;  %p1876_p9 = scmp.lt.u32.totalorder %s1872_s26, %s2117_s0 }
  0x19   :  { %p1878_p10 = pnand %p1876_p9, %p1873_p8 }
  0x1b   :  { %1881 = shalt.err (!%p1878_p10)
}
  0x1c   :  { %s1882_s10 = scalar_lea.vmem %s26_s14, 64  ;;  %p1887_p12 = scmp.lt.s32.totalorder %s26_s14, %s26_s14 }
  0x1d   :  { %p1883_p11 = scmp.ne.s32.totalorder %s26_s14, %s1882_s10  ;;  %p1888_p13 = scmp.lt.s32.totalorder %s1882_s10, %s1882_s10 }
  0x1f   :  { %p1889_p0 = por %p1888_p13, %p1887_p12 }
  0x21   :  { %p1890_p1 = pnand %p1889_p0, %p1883_p11 }
  0x23   :  { %1893 = shalt.err (!%p1890_p1)
}
  0x24   :  { %28 = dma.hbm_to_vmem [thread:$0]  %s2117_s0, 64, %s26_s14, [#allocation4]  }
  0x25   :  { %s1946_s12 = smov [#allocation7]   ;;  %s1894_s17 = scalar_lea.hbm %s2119_s2, 6144 }
  0x26   :  { %s44_s13 = sshll.u32 %s1946_s12, 4  ;;  %p1895_p2 = scmp.ne.s32.totalorder %s2119_s2, %s1894_s17  ;;  %s45_s13 = int_to_ptr.vmem [resolvable:$true] %s44_s13 }
  0x27   :  { %p1898_p3 = scmp.lt.u32.totalorder %s1894_s17, %s2119_s2 }
  0x29   :  { %p1900_p4 = pnand %p1898_p3, %p1895_p2 }
  0x2b   :  { %1903 = shalt.err (!%p1900_p4)
}
  0x2c   :  { %s1904_s21 = scalar_lea.vmem %s45_s13, 6144  ;;  %p1909_p6 = scmp.lt.s32.totalorder %s45_s13, %s45_s13 }
  0x2d   :  { %p1905_p5 = scmp.ne.s32.totalorder %s45_s13, %s1904_s21  ;;  %p1910_p7 = scmp.lt.s32.totalorder %s1904_s21, %s1904_s21 }
  0x2f   :  { %p1911_p8 = por %p1910_p7, %p1909_p6 }
  0x31   :  { %p1912_p9 = pnand %p1911_p8, %p1905_p5 }
  0x33   :  { %1915 = shalt.err (!%p1912_p9)
}
  0x34   :  { %s1947_s0 = smov 256   ;;  %s1948_s14 = smov 16  }
  0x35   :  { %50 = dma.hbm_to_vmem [thread:$0]  %s2119_s2, 6144, %s45_s13, [#allocation6], %s1947_s0, %s1947_s0, %s1948_s14  }
  0x36   :  { %s1949_s24 = smov [#allocation8]   ;;  %s1916_s28 = scalar_lea.hbm %s2121_s4, 12288 }
  0x37   :  { %s58_s25 = sshll.u32 %s1949_s24, 4  ;;  %p1917_p10 = scmp.ne.s32.totalorder %s2121_s4, %s1916_s28  ;;  %s59_s25 = int_to_ptr.vmem [resolvable:$true] %s58_s25 }
  0x38   :  { %p1920_p11 = scmp.lt.u32.totalorder %s1916_s28, %s2121_s4 }
  0x3a   :  { %p1922_p12 = pnand %p1920_p11, %p1917_p10 }
  0x3c   :  { %1925 = shalt.err (!%p1922_p12)
}
  0x3d   :  { %s1926_s11 = scalar_lea.vmem %s59_s25, 12288  ;;  %p1931_p0 = scmp.lt.s32.totalorder %s59_s25, %s59_s25 }
  0x3e   :  { %p1927_p13 = scmp.ne.s32.totalorder %s59_s25, %s1926_s11  ;;  %p1932_p1 = scmp.lt.s32.totalorder %s1926_s11, %s1926_s11 }
  0x40   :  { %p1933_p2 = por %p1932_p1, %p1931_p0 }
  0x42   :  { %p1934_p3 = pnand %p1933_p2, %p1927_p13 }
  0x44   :  { %1937 = shalt.err (!%p1934_p3)
}
  0x45   :  { %s1950_s2 = smov 192   ;;  %s1951_s12 = smov 12  }
  0x46   :  { %64 = dma.hbm_to_vmem [thread:$0]  %s2121_s4, 12288, %s59_s25, [#allocation9], %s1950_s2, %s1950_s2, %s1951_s12  }
  0x47   :  { %1938 = dma.done.wait [#allocation4], 64  }
  0x48   :  { %1939 = vsyncadd [#allocation4], 4294967232 }
  0x49   :  { %1940 = dma.done.wait [#allocation6], 6176  }
  0x4a   :  { %1941 = vsyncadd [#allocation6], 4294961120 }
  0x4b   :  { %1942 = dma.done.wait [#allocation9], 12288  }
  0x4c   :  { %1943 = vsyncadd [#allocation9], 4294955008  ;;  %v1650_v1 = vld [vmem:[#allocation7 + $0x4] ss:$16 sps:$4 sm:$0xff]   ;;  %v1652_v2 = vld [vmem:[#allocation7 + $0xc] ss:$16 sps:$4 sm:$0xff]  }
  0x4d   :  { %414 = vmatprep.subr.bf16.mxu0 %v1650_v1  ;;  %v1654_v3 = vld [vmem:[#allocation7] ss:$16 sps:$4 sm:$0xff]   ;;  %v1655_v4 = vld [vmem:[#allocation7 + $0x8] ss:$16 sps:$4 sm:$0xff]   ;;  %455 = vmatprep.subr.bf16.mxu1 %v1652_v2  ;;  %v1656_v5 = vld [vmem:[#allocation7 + $0x24] ss:$16 sps:$4 sm:$0xff]  }
  0x4e   :  { %415 = vmatpush1.bf16.msra.mxu0 %v1654_v3  ;;  %456 = vmatpush1.bf16.msra.mxu1 %v1655_v4  ;;  %v1658_v6 = vld [vmem:[#allocation7 + $0x2c] ss:$16 sps:$4 sm:$0xff]   ;;  %v1660_v7 = vld [vmem:[#allocation7 + $0x20] ss:$16 sps:$4 sm:$0xff]   ;;  %v1661_v8 = vld [vmem:[#allocation7 + $0x28] ss:$16 sps:$4 sm:$0xff]  }
  0x4f   :  { %416 = vmatprep.subr.bf16.mxu0 %v1656_v5  ;;  %457 = vmatprep.subr.bf16.mxu1 %v1658_v6  ;;  %v1662_v9 = vld [vmem:[#allocation7 + $0x44] ss:$16 sps:$4 sm:$0xff]   ;;  %v1664_v10 = vld [vmem:[#allocation7 + $0x4c] ss:$16 sps:$4 sm:$0xff]   ;;  %v1666_v11 = vld [vmem:[#allocation7 + $0x40] ss:$16 sps:$4 sm:$0xff]  }
  0x50   :  { %v1667_v12 = vld [vmem:[#allocation7 + $0x48] ss:$16 sps:$4 sm:$0xff]   ;;  %v1668_v13 = vld [vmem:[#allocation7 + $0x64] ss:$16 sps:$4 sm:$0xff]   ;;  %v1670_v14 = vld [vmem:[#allocation7 + $0x6c] ss:$16 sps:$4 sm:$0xff]  }
  0x51   :  { %v1672_v15 = vld [vmem:[#allocation7 + $0x60] ss:$16 sps:$4 sm:$0xff]   ;;  %v1673_v16 = vld [vmem:[#allocation7 + $0x68] ss:$16 sps:$4 sm:$0xff]   ;;  %v1674_v17 = vld [vmem:[#allocation7 + $0x84] ss:$16 sps:$4 sm:$0xff]  }
  0x52   :  { %417 = vmatpush1.bf16.msra.mxu0 %v1660_v7  ;;  %458 = vmatpush1.bf16.msra.mxu1 %v1661_v8  ;;  %v1676_v18 = vld [vmem:[#allocation7 + $0x8c] ss:$16 sps:$4 sm:$0xff]   ;;  %v1678_v19 = vld [vmem:[#allocation7 + $0x80] ss:$16 sps:$4 sm:$0xff]   ;;  %v1679_v20 = vld [vmem:[#allocation7 + $0x88] ss:$16 sps:$4 sm:$0xff]  }
  0x53   :  { %418 = vmatprep.subr.bf16.mxu0 %v1662_v9  ;;  %459 = vmatprep.subr.bf16.mxu1 %v1664_v10  ;;  %v1680_v21 = vld [vmem:[#allocation7 + $0xa4] ss:$16 sps:$4 sm:$0xff]   ;;  %v1682_v22 = vld [vmem:[#allocation7 + $0xac] ss:$16 sps:$4 sm:$0xff]   ;;  %v1684_v23 = vld [vmem:[#allocation7 + $0xa0] ss:$16 sps:$4 sm:$0xff]  }
  0x54   :  { %v1685_v24 = vld [vmem:[#allocation7 + $0xa8] ss:$16 sps:$4 sm:$0xff]   ;;  %v1686_v25 = vld [vmem:[#allocation7 + $0xc4] ss:$16 sps:$4 sm:$0xff]   ;;  %v1688_v26 = vld [vmem:[#allocation7 + $0xcc] ss:$16 sps:$4 sm:$0xff]  }
  0x55   :  { %v1690_v27 = vld [vmem:[#allocation7 + $0xc0] ss:$16 sps:$4 sm:$0xff]   ;;  %v1691_v28 = vld [vmem:[#allocation7 + $0xc8] ss:$16 sps:$4 sm:$0xff]   ;;  %v1692_v29 = vld [vmem:[#allocation7 + $0xe4] ss:$16 sps:$4 sm:$0xff]  }
  0x56   :  { %419 = vmatpush1.bf16.msra.mxu0 %v1666_v11  ;;  %460 = vmatpush1.bf16.msra.mxu1 %v1667_v12  ;;  %v1694_v30 = vld [vmem:[#allocation7 + $0xec] ss:$16 sps:$4 sm:$0xff]   ;;  %v1696_v31 = vld [vmem:[#allocation7 + $0xe0] ss:$16 sps:$4 sm:$0xff]   ;;  %v1697_v32 = vld [vmem:[#allocation7 + $0xe8] ss:$16 sps:$4 sm:$0xff]  }
  0x57   :  { %420 = vmatprep.subr.bf16.mxu0 %v1668_v13  ;;  %461 = vmatprep.subr.bf16.mxu1 %v1670_v14  ;;  %v1698_v33 = vld [vmem:[#allocation7 + $0x104] ss:$16 sps:$4 sm:$0xff]   ;;  %v1700_v34 = vld [vmem:[#allocation7 + $0x10c] ss:$16 sps:$4 sm:$0xff]   ;;  %v1702_v35 = vld [vmem:[#allocation7 + $0x100] ss:$16 sps:$4 sm:$0xff]  }
  0x58   :  { %v1703_v36 = vld [vmem:[#allocation7 + $0x108] ss:$16 sps:$4 sm:$0xff]   ;;  %v1704_v38 = vld [vmem:[#allocation7 + $0x124] ss:$16 sps:$4 sm:$0xff]   ;;  %v1706_v39 = vld [vmem:[#allocation7 + $0x12c] ss:$16 sps:$4 sm:$0xff]  }
  0x59   :  { %v1445_v37 = vld.sshfl [vmem:[#allocation3] sm:$0x33 pattern:$0x76325410]  ;;  %v1708_v41 = vld [vmem:[#allocation7 + $0x120] ss:$16 sps:$4 sm:$0xff]  }
  0x5a   :  { %421 = vmatpush1.bf16.msra.mxu0 %v1672_v15  ;;  %462 = vmatpush1.bf16.msra.mxu1 %v1673_v16  ;;  %v95_v40 = vcombine.high %v1445_v37, %v1445_v37  ;;  %vm410_vm0 = vcmask 523264   ;;  %v1709_v43 = vld [vmem:[#allocation7 + $0x128] ss:$16 sps:$4 sm:$0xff]   ;;  %v1710_v44 = vld [vmem:[#allocation7 + $0x144] ss:$16 sps:$4 sm:$0xff]   ;;  %v98_v54 = vpack.c.bf16 %v1445_v37, %v1445_v37  ;;  %vm1424_vm1 = vcmask 1041408  }
  0x5b   :  { %422 = vmatprep.subr.bf16.mxu0 %v1674_v17  ;;  %463 = vmatprep.subr.bf16.mxu1 %v1676_v18  ;;  %v1712_v45 = vld [vmem:[#allocation7 + $0x14c] ss:$16 sps:$4 sm:$0xff]   ;;  %v1714_v46 = vld [vmem:[#allocation7 + $0x140] ss:$16 sps:$4 sm:$0xff]   ;;  %v1715_v47 = vld [vmem:[#allocation7 + $0x148] ss:$16 sps:$4 sm:$0xff]  }
  0x5c   :  { %v99_v42 = vpack.c.bf16 %v95_v40, %v95_v40  ;;  %v1716_v48 = vld [vmem:[#allocation7 + $0x164] ss:$16 sps:$4 sm:$0xff]   ;;  %v1718_v49 = vld [vmem:[#allocation7 + $0x16c] ss:$16 sps:$4 sm:$0xff]   ;;  %v1720_v50 = vld [vmem:[#allocation7 + $0x160] ss:$16 sps:$4 sm:$0xff]  }
  0x5d   :  { %v1721_v51 = vld [vmem:[#allocation7 + $0x168] ss:$16 sps:$4 sm:$0xff]   ;;  %v1724_v52 = vld [vmem:[#allocation8 + $0x4] ss:$12 sps:$4 sm:$0xff]   ;;  %v1722_v55 = vld [vmem:[#allocation8] ss:$12 sps:$4 sm:$0xff]  }
  0x5e   :  { %423 = vmatpush1.bf16.msra.mxu0 %v1678_v19  ;;  %464 = vmatpush1.bf16.msra.mxu1 %v1679_v20  ;;  %v1727_v53 = vld [vmem:[#allocation8 + $0x184] ss:$12 sps:$4 sm:$0xff]   ;;  %v1725_v56 = vld [vmem:[#allocation8 + $0x180] ss:$12 sps:$4 sm:$0xff]   ;;  %v1730_v57 = vld [vmem:[#allocation8 + $0x1c] ss:$12 sps:$4 sm:$0xff]  }
  0x5f   :  { %424 = vmatprep.subr.bf16.mxu0 %v1680_v21  ;;  %465 = vmatprep.subr.bf16.mxu1 %v1682_v22  ;;  %v1733_v58 = vld [vmem:[#allocation8 + $0x19c] ss:$12 sps:$4 sm:$0xff]   ;;  %v1728_v59 = vld [vmem:[#allocation8 + $0x18] ss:$12 sps:$4 sm:$0xff]   ;;  %v1736_v61 = vld [vmem:[#allocation8 + $0x34] ss:$12 sps:$4 sm:$0xff]  }
  0x60   :  { %1494 = vmatprep.mubr.msk.bf16.mxu0 %vm410_vm0, %v99_v42  ;;  %1495 = vmatprep.mubr.msk.bf16.mxu1 %vm410_vm0, %v99_v42  ;;  %v1731_v60 = vld [vmem:[#allocation8 + $0x198] ss:$12 sps:$4 sm:$0xff]   ;;  %v1739_v62 = vld [vmem:[#allocation8 + $0x1b4] ss:$12 sps:$4 sm:$0xff]   ;;  %v1734_v63 = vld [vmem:[#allocation8 + $0x30] ss:$12 sps:$4 sm:$0xff]  }
  0x61   :  { %v1737_v0 = vld [vmem:[#allocation8 + $0x1b0] ss:$12 sps:$4 sm:$0xff]   ;;  %v1742_v1 = vld [vmem:[#allocation8 + $0x4c] ss:$12 sps:$4 sm:$0xff]   ;;  %v1740_v3 = vld [vmem:[#allocation8 + $0x48] ss:$12 sps:$4 sm:$0xff]  }
  0x62   :  { %425 = vmatpush1.bf16.msra.mxu0 %v1684_v23  ;;  %466 = vmatpush1.bf16.msra.mxu1 %v1685_v24  ;;  %v1745_v2 = vld [vmem:[#allocation8 + $0x1cc] ss:$12 sps:$4 sm:$0xff]   ;;  %v1743_v4 = vld [vmem:[#allocation8 + $0x1c8] ss:$12 sps:$4 sm:$0xff]   ;;  %v1748_v5 = vld [vmem:[#allocation8 + $0x64] ss:$12 sps:$4 sm:$0xff]  }
  0x63   :  { %426 = vmatprep.subr.bf16.mxu0 %v1686_v25  ;;  %467 = vmatprep.subr.bf16.mxu1 %v1688_v26  ;;  %v1751_v6 = vld [vmem:[#allocation8 + $0x1e4] ss:$12 sps:$4 sm:$0xff]   ;;  %v1746_v7 = vld [vmem:[#allocation8 + $0x60] ss:$12 sps:$4 sm:$0xff]   ;;  %v1754_v9 = vld [vmem:[#allocation8 + $0x7c] ss:$12 sps:$4 sm:$0xff]  }
  0x64   :  { %v1749_v8 = vld [vmem:[#allocation8 + $0x1e0] ss:$12 sps:$4 sm:$0xff]   ;;  %v1757_v10 = vld [vmem:[#allocation8 + $0x1fc] ss:$12 sps:$4 sm:$0xff]   ;;  %v1752_v11 = vld [vmem:[#allocation8 + $0x78] ss:$12 sps:$4 sm:$0xff]  }
  0x65   :  { %v1755_v12 = vld [vmem:[#allocation8 + $0x1f8] ss:$12 sps:$4 sm:$0xff]   ;;  %v1760_v13 = vld [vmem:[#allocation8 + $0x94] ss:$12 sps:$4 sm:$0xff]   ;;  %v1758_v15 = vld [vmem:[#allocation8 + $0x90] ss:$12 sps:$4 sm:$0xff]  }
  0x66   :  { %427 = vmatpush1.bf16.msra.mxu0 %v1690_v27  ;;  %468 = vmatpush1.bf16.msra.mxu1 %v1691_v28  ;;  %v1763_v14 = vld [vmem:[#allocation8 + $0x214] ss:$12 sps:$4 sm:$0xff]   ;;  %v1761_v16 = vld [vmem:[#allocation8 + $0x210] ss:$12 sps:$4 sm:$0xff]   ;;  %v1766_v17 = vld [vmem:[#allocation8 + $0xac] ss:$12 sps:$4 sm:$0xff]  }
  0x67   :  { %428 = vmatprep.subr.bf16.mxu0 %v1692_v29  ;;  %469 = vmatprep.subr.bf16.mxu1 %v1694_v30  ;;  %v1769_v18 = vld [vmem:[#allocation8 + $0x22c] ss:$12 sps:$4 sm:$0xff]   ;;  %v1764_v19 = vld [vmem:[#allocation8 + $0xa8] ss:$12 sps:$4 sm:$0xff]   ;;  %v1772_v21 = vld [vmem:[#allocation8 + $0xc4] ss:$12 sps:$4 sm:$0xff]  }
  0x68   :  { %v1767_v20 = vld [vmem:[#allocation8 + $0x228] ss:$12 sps:$4 sm:$0xff]   ;;  %v1775_v22 = vld [vmem:[#allocation8 + $0x244] ss:$12 sps:$4 sm:$0xff]   ;;  %v1770_v23 = vld [vmem:[#allocation8 + $0xc0] ss:$12 sps:$4 sm:$0xff]  }
  0x69   :  { %v1773_v24 = vld [vmem:[#allocation8 + $0x240] ss:$12 sps:$4 sm:$0xff]   ;;  %v1778_v25 = vld [vmem:[#allocation8 + $0xdc] ss:$12 sps:$4 sm:$0xff]   ;;  %v1776_v27 = vld [vmem:[#allocation8 + $0xd8] ss:$12 sps:$4 sm:$0xff]  }
  0x6a   :  { %429 = vmatpush1.bf16.msra.mxu0 %v1696_v31  ;;  %470 = vmatpush1.bf16.msra.mxu1 %v1697_v32  ;;  %v1781_v26 = vld [vmem:[#allocation8 + $0x25c] ss:$12 sps:$4 sm:$0xff]   ;;  %v1779_v28 = vld [vmem:[#allocation8 + $0x258] ss:$12 sps:$4 sm:$0xff]   ;;  %v1784_v29 = vld [vmem:[#allocation8 + $0xf4] ss:$12 sps:$4 sm:$0xff]  }
  0x6b   :  { %430 = vmatprep.subr.bf16.mxu0 %v1698_v33  ;;  %471 = vmatprep.subr.bf16.mxu1 %v1700_v34  ;;  %v1787_v30 = vld [vmem:[#allocation8 + $0x274] ss:$12 sps:$4 sm:$0xff]   ;;  %v1782_v31 = vld [vmem:[#allocation8 + $0xf0] ss:$12 sps:$4 sm:$0xff]   ;;  %v1790_v33 = vld [vmem:[#allocation8 + $0x10c] ss:$12 sps:$4 sm:$0xff]  }
  0x6c   :  { %v1785_v32 = vld [vmem:[#allocation8 + $0x270] ss:$12 sps:$4 sm:$0xff]   ;;  %v1793_v34 = vld [vmem:[#allocation8 + $0x28c] ss:$12 sps:$4 sm:$0xff]   ;;  %vm1436_vm2 = vcmask 1024  }
  0x6d   :  { %v1796_v37 = vld [vmem:[#allocation8 + $0x124] ss:$12 sps:$4 sm:$0xff]   ;;  %v1797_v40 = vld [vmem:[#allocation8 + $0x2a0] ss:$12 sps:$4 sm:$0xff]   ;;  %v1805_v42 = vld [vmem:[#allocation8 + $0x2bc] ss:$12 sps:$4 sm:$0xff]  }
  0x6e   :  { %431 = vmatpush1.bf16.msra.mxu0 %v1702_v35  ;;  %472 = vmatpush1.bf16.msra.mxu1 %v1703_v36  ;;  %v1788_v35 = vld [vmem:[#allocation8 + $0x108] ss:$12 sps:$4 sm:$0xff]  }
  0x6f   :  { %432 = vmatprep.subr.bf16.mxu0 %v1704_v38  ;;  %473 = vmatprep.subr.bf16.mxu1 %v1706_v39  ;;  %v1791_v36 = vld [vmem:[#allocation8 + $0x288] ss:$12 sps:$4 sm:$0xff]   ;;  %v1799_v38 = vld [vmem:[#allocation8 + $0x2a4] ss:$12 sps:$4 sm:$0xff]   ;;  %v1794_v39 = vld [vmem:[#allocation8 + $0x120] ss:$12 sps:$4 sm:$0xff]  }
  0x72   :  { %433 = vmatpush1.bf16.msra.mxu0 %v1708_v41  ;;  %474 = vmatpush1.bf16.msra.mxu1 %v1709_v43  ;;  %v1802_v41 = vld [vmem:[#allocation8 + $0x13c] ss:$12 sps:$4 sm:$0xff]   ;;  %v1800_v43 = vld [vmem:[#allocation8 + $0x138] ss:$12 sps:$4 sm:$0xff]  }
  0x73   :  { %434 = vmatprep.subr.bf16.mxu0 %v1710_v44  ;;  %475 = vmatprep.subr.bf16.mxu1 %v1712_v45  ;;  %v1803_v44 = vld [vmem:[#allocation8 + $0x2b8] ss:$12 sps:$4 sm:$0xff]   ;;  %v1808_v45 = vld [vmem:[#allocation8 + $0x154] ss:$12 sps:$4 sm:$0xff]  }
  0x76   :  { %435 = vmatpush1.bf16.msra.mxu0 %v1714_v46  ;;  %476 = vmatpush1.bf16.msra.mxu1 %v1715_v47  ;;  %v1811_v46 = vld [vmem:[#allocation8 + $0x2d4] ss:$12 sps:$4 sm:$0xff]   ;;  %v1806_v47 = vld [vmem:[#allocation8 + $0x150] ss:$12 sps:$4 sm:$0xff]  }
  0x77   :  { %436 = vmatprep.subr.bf16.mxu0 %v1716_v48  ;;  %477 = vmatprep.subr.bf16.mxu1 %v1718_v49  ;;  %v1809_v48 = vld [vmem:[#allocation8 + $0x2d0] ss:$12 sps:$4 sm:$0xff]   ;;  %v1814_v49 = vld [vmem:[#allocation8 + $0x16c] ss:$12 sps:$4 sm:$0xff]  }
  0x7a   :  { %437 = vmatpush1.bf16.msra.mxu0 %v1720_v50  ;;  %478 = vmatpush1.bf16.msra.mxu1 %v1721_v51  ;;  %v1817_v50 = vld [vmem:[#allocation8 + $0x2ec] ss:$12 sps:$4 sm:$0xff]   ;;  %v1812_v51 = vld [vmem:[#allocation8 + $0x168] ss:$12 sps:$4 sm:$0xff]  }
  0x7b   :  { %1161 = vmatprep.subr.bf16.mxu0 %v1724_v52  ;;  %1202 = vmatprep.subr.bf16.mxu1 %v1727_v53  ;;  %v1815_v52 = vld [vmem:[#allocation8 + $0x2e8] ss:$12 sps:$4 sm:$0xff]  }
  0x7c   :  { %v1818_v53 = vld [vmem:[#allocation8 + $0xc8] ss:$12 sps:$4 sm:$0xff]  }
  0x7d   :  { %447 = vmatmul.mubr.bf16.vlgmr.msra.gmra.mrb[0].mxu0 %v98_v54  ;;  %488 = vmatmul.mubr.bf16.vlgmr.msra.gmra.mrb[0].mxu1 %v98_v54  ;;  %v1819_v54 = vld [vmem:[#allocation8 + $0x248] ss:$12 sps:$4 sm:$0xff]  }
  0x7e   :  { %1162 = vmatpush1.bf16.msra.mxu0 %v1722_v55  ;;  %1203 = vmatpush1.bf16.msra.mxu1 %v1725_v56  ;;  %v1323_v55 = vld [vmem:[#allocation5] sm:$0x3]  ;;  %v1952_v56 = vmov 0  }
  0x7f   :  { %1163 = vmatprep.subr.bf16.mxu0 %v1730_v57  ;;  %1204 = vmatprep.subr.bf16.mxu1 %v1733_v58  ;;  %v1953_v57 = vmov 1   ;;  %v150_v58 = vlaneseq }
  0x80   :  { %1648 = vset.pattern.permute.xlu0 %v1952_v56  ;;  %v1324_v56 = vld [vmem:[%s2122_s5] sm:$0x3f] }
  0x81   :  { %1327 = vperm.xlu0 %1648, %v1323_v55  }
  0x82   :  { %1164 = vmatpush1.bf16.msra.mxu0 %v1728_v59  ;;  %1205 = vmatpush1.bf16.msra.mxu1 %v1731_v60  ;;  %v2055_v59 = vshrl.u32 %v150_v58, 7 }
  0x83   :  { %1165 = vmatprep.subr.bf16.mxu0 %v1736_v61  ;;  %1206 = vmatprep.subr.bf16.mxu1 %v1739_v62  ;;  %v148_v62 = vld [vmem:[%s2120_s3] sm:$0xf] }
  0x84   :  { %v2058_v60 = vsub.s32 0, %v2055_v59  ;;  %v2061_v61 = vsub.s32 2, %v2055_v59 }
  0x85   :  { %1649 = vset.pattern.permute.xlu0 %v1953_v57 }
  0x86   :  { %1166 = vmatpush1.bf16.msra.mxu0 %v1734_v63  ;;  %1207 = vmatpush1.bf16.msra.mxu1 %v1737_v0  ;;  %v2067_v63 = vsub.s32 1, %v2055_v59  ;;  %v164_v0 = vsub.s32 3, %v2055_v59  ;;  %v1334_v57 = vrot.slane %v1324_v56, %v2058_v60 }
  0x87   :  { %1167 = vmatprep.subr.bf16.mxu0 %v1742_v1  ;;  %1208 = vmatprep.subr.bf16.mxu1 %v1745_v2  ;;  %v153_v1 = vrot.slane %v148_v62, %v2058_v60  ;;  %v161_v2 = vrot.slane %v148_v62, %v2061_v61 }
  0x88   :  { %1365 = vperm.xlu0 %1649, %v1323_v55   ;;  %v1432_v55 = vld [vmem:[#allocation2] sm:$0x1] }
  0x89   :  { %1636 = vpush %v1432_v55 }
  0x8a   :  { %1168 = vmatpush1.bf16.msra.mxu0 %v1740_v3  ;;  %1209 = vmatpush1.bf16.msra.mxu1 %v1743_v4  ;;  %v157_v3 = vrot.slane %v148_v62, %v2067_v63  ;;  %v165_v4 = vrot.slane %v148_v62, %v164_v0  ;;  %v1338_v62 = vrot.slane %v1324_v56, %v2061_v61 }
  0x8b   :  { %1169 = vmatprep.subr.bf16.mxu0 %v1748_v5  ;;  %1210 = vmatprep.subr.bf16.mxu1 %v1751_v6 }
  0x8e   :  { %1170 = vmatpush1.bf16.msra.mxu0 %v1746_v7  ;;  %1211 = vmatpush1.bf16.msra.mxu1 %v1749_v8 }
  0x8f   :  { %1171 = vmatprep.subr.bf16.mxu0 %v1754_v9  ;;  %1212 = vmatprep.subr.bf16.mxu1 %v1757_v10 }
  0x92   :  { %1172 = vmatpush1.bf16.msra.mxu0 %v1752_v11  ;;  %1213 = vmatpush1.bf16.msra.mxu1 %v1755_v12 }
  0x93   :  { %1173 = vmatprep.subr.bf16.mxu0 %v1760_v13  ;;  %1214 = vmatprep.subr.bf16.mxu1 %v1763_v14 }
  0x96   :  { %1174 = vmatpush1.bf16.msra.mxu0 %v1758_v15  ;;  %1215 = vmatpush1.bf16.msra.mxu1 %v1761_v16 }
  0x97   :  { %1175 = vmatprep.subr.bf16.mxu0 %v1766_v17  ;;  %1216 = vmatprep.subr.bf16.mxu1 %v1769_v18 }
  0x9a   :  { %1176 = vmatpush1.bf16.msra.mxu0 %v1764_v19  ;;  %1217 = vmatpush1.bf16.msra.mxu1 %v1767_v20 }
  0x9b   :  { %1177 = vmatprep.subr.bf16.mxu0 %v1772_v21  ;;  %1218 = vmatprep.subr.bf16.mxu1 %v1775_v22 }
  0x9e   :  { %1178 = vmatpush1.bf16.msra.mxu0 %v1770_v23  ;;  %1219 = vmatpush1.bf16.msra.mxu1 %v1773_v24  ;;  %v1820_v24 = vld [vmem:[#allocation8 + $0x8] ss:$12 sps:$4 sm:$0xff]  }
  0x9f   :  { %1179 = vmatprep.subr.bf16.mxu0 %v1778_v25  ;;  %1220 = vmatprep.subr.bf16.mxu1 %v1781_v26  ;;  %v1821_v25 = vld [vmem:[#allocation8 + $0x188] ss:$12 sps:$4 sm:$0xff]  }
  0xa2   :  { %1180 = vmatpush1.bf16.msra.mxu0 %v1776_v27  ;;  %1221 = vmatpush1.bf16.msra.mxu1 %v1779_v28  ;;  %v1822_v27 = vld [vmem:[#allocation8 + $0xe0] ss:$12 sps:$4 sm:$0xff]  }
  0xa3   :  { %1181 = vmatprep.subr.bf16.mxu0 %v1784_v29  ;;  %1222 = vmatprep.subr.bf16.mxu1 %v1787_v30  ;;  %v1823_v28 = vld [vmem:[#allocation8 + $0x260] ss:$12 sps:$4 sm:$0xff]  }
  0xa4   :  { %v1824_v29 = vld [vmem:[#allocation8 + $0x20] ss:$12 sps:$4 sm:$0xff]  }
  0xa5   :  { %v1825_v30 = vld [vmem:[#allocation8 + $0x1a0] ss:$12 sps:$4 sm:$0xff]  }
  0xa6   :  { %1182 = vmatpush1.bf16.msra.mxu0 %v1782_v31  ;;  %1223 = vmatpush1.bf16.msra.mxu1 %v1785_v32  ;;  %v1826_v31 = vld [vmem:[#allocation8 + $0xf8] ss:$12 sps:$4 sm:$0xff]  }
  0xa7   :  { %1183 = vmatprep.subr.bf16.mxu0 %v1790_v33  ;;  %1224 = vmatprep.subr.bf16.mxu1 %v1793_v34  ;;  %v1827_v32 = vld [vmem:[#allocation8 + $0x278] ss:$12 sps:$4 sm:$0xff]  }
  0xa8   :  { %v1828_v33 = vld [vmem:[#allocation8 + $0x38] ss:$12 sps:$4 sm:$0xff]  }
  0xa9   :  { %v1829_v34 = vld [vmem:[#allocation8 + $0x1b8] ss:$12 sps:$4 sm:$0xff]  }
  0xaa   :  { %1184 = vmatpush1.bf16.msra.mxu0 %v1788_v35  ;;  %1225 = vmatpush1.bf16.msra.mxu1 %v1791_v36  ;;  %v1830_v35 = vld [vmem:[#allocation8 + $0x110] ss:$12 sps:$4 sm:$0xff]  }
  0xab   :  { %1185 = vmatprep.subr.bf16.mxu0 %v1796_v37  ;;  %1226 = vmatprep.subr.bf16.mxu1 %v1799_v38  ;;  %v1831_v36 = vld [vmem:[#allocation8 + $0x290] ss:$12 sps:$4 sm:$0xff]  }
  0xac   :  { %v1832_v37 = vld [vmem:[#allocation8 + $0x50] ss:$12 sps:$4 sm:$0xff]  }
  0xad   :  { %v1833_v38 = vld [vmem:[#allocation8 + $0x1d0] ss:$12 sps:$4 sm:$0xff]  }
  0xae   :  { %1186 = vmatpush1.bf16.msra.mxu0 %v1794_v39  ;;  %1227 = vmatpush1.bf16.msra.mxu1 %v1797_v40  ;;  %v1834_v39 = vld [vmem:[#allocation8 + $0x128] ss:$12 sps:$4 sm:$0xff]  }
  0xaf   :  { %1187 = vmatprep.subr.bf16.mxu0 %v1802_v41  ;;  %1228 = vmatprep.subr.bf16.mxu1 %v1805_v42  ;;  %v1835_v40 = vld [vmem:[#allocation8 + $0x2a8] ss:$12 sps:$4 sm:$0xff]  }
  0xb0   :  { %v1836_v41 = vld [vmem:[#allocation8 + $0x68] ss:$12 sps:$4 sm:$0xff]  }
  0xb1   :  { %v1837_v42 = vld [vmem:[#allocation8 + $0x1e8] ss:$12 sps:$4 sm:$0xff]  }
  0xb2   :  { %1188 = vmatpush1.bf16.msra.mxu0 %v1800_v43  ;;  %1229 = vmatpush1.bf16.msra.mxu1 %v1803_v44  ;;  %v1838_v43 = vld [vmem:[#allocation8 + $0x140] ss:$12 sps:$4 sm:$0xff]  }
  0xb3   :  { %1189 = vmatprep.subr.bf16.mxu0 %v1808_v45  ;;  %1230 = vmatprep.subr.bf16.mxu1 %v1811_v46  ;;  %v1839_v44 = vld [vmem:[#allocation8 + $0x2c0] ss:$12 sps:$4 sm:$0xff]  }
  0xb4   :  { %v1840_v45 = vld [vmem:[#allocation8 + $0x80] ss:$12 sps:$4 sm:$0xff]  }
  0xb5   :  { %v1841_v46 = vld [vmem:[#allocation8 + $0x200] ss:$12 sps:$4 sm:$0xff]  }
  0xb6   :  { %1190 = vmatpush1.bf16.msra.mxu0 %v1806_v47  ;;  %1231 = vmatpush1.bf16.msra.mxu1 %v1809_v48  ;;  %v1842_v47 = vld [vmem:[#allocation8 + $0x158] ss:$12 sps:$4 sm:$0xff]  }
  0xb7   :  { %1191 = vmatprep.subr.bf16.mxu0 %v1814_v49  ;;  %1232 = vmatprep.subr.bf16.mxu1 %v1817_v50  ;;  %v1843_v48 = vld [vmem:[#allocation8 + $0x2d8] ss:$12 sps:$4 sm:$0xff]  }
  0xb8   :  { %v1844_v49 = vld [vmem:[#allocation8 + $0x98] ss:$12 sps:$4 sm:$0xff]  }
  0xb9   :  { %v1845_v50 = vld [vmem:[#allocation8 + $0x218] ss:$12 sps:$4 sm:$0xff]  }
  0xba   :  { %1192 = vmatpush1.bf16.msra.mxu0 %v1812_v51  ;;  %1233 = vmatpush1.bf16.msra.mxu1 %v1815_v52  ;;  %v1846_v51 = vld [vmem:[#allocation8 + $0x170] ss:$12 sps:$4 sm:$0xff]  }
  0xbb   :  { %1592 = vmatprep.subr.bf16.mxu0 %v1818_v53  ;;  %1614 = vmatprep.subr.bf16.mxu1 %v1819_v54  ;;  %v1847_v52 = vld [vmem:[#allocation8 + $0x2f0] ss:$12 sps:$4 sm:$0xff]  }
  0xbc   :  { %v1848_v53 = vld [vmem:[#allocation8 + $0xb0] ss:$12 sps:$4 sm:$0xff]  }
  0xbd   :  { %v1849_v54 = vld [vmem:[#allocation8 + $0x230] ss:$12 sps:$4 sm:$0xff]  }
 0x100   :  { %v1328_v58 = vpop.permute.xlu0 %1327 }
 0x150   :  { %v448_v5 = vpop.f32.mrb[0].mxu0  ;;  %v489_v6 = vpop.f32.mrb[0].mxu1 }
 0x151   :  { %v449_v7 = vadd.f32 %v448_v5, %v153_v1  ;;  %v490_v8 = vadd.f32 %v489_v6, %v161_v2  ;;  %v450_v9 = vpop.f32.mrb[1].mxu0  ;;  %v491_v10 = vpop.f32.mrb[1].mxu1  ;;  %v632_v1 = vld [vmem:[%s2123_s6] sm:$0x7]  ;;  %v1371_v2 = vrot.slane %v1324_v56, %v2067_v63  ;;  %v1353_v6 = vrot.slane %v1338_v62, %v2058_v60 }
 0x152   :  { %v451_v11 = vadd.f32 %v450_v9, %v157_v3  ;;  %v492_v12 = vadd.f32 %v491_v10, %v165_v4  ;;  %v452_v13 = vpop.f32.mrb[2].mxu0  ;;  %v493_v14 = vpop.f32.mrb[2].mxu1  ;;  %v1375_v3 = vrot.slane %v1324_v56, %v164_v0  ;;  %v1349_v4 = vrot.slane %v1334_v57, %v2058_v60 }
 0x153   :  { %v496_v15 = vmax.f32 %v449_v7, 0.0  ;;  %v498_v16 = vmax.f32 %v490_v8, 0.0  ;;  %v453_v17 = vpop.f32.mrb[3].mxu0  ;;  %v494_v18 = vpop.f32.mrb[3].mxu1  ;;  %v637_v5 = vrot.slane %v632_v1, %v2058_v60  ;;  %v641_v7 = vrot.slane %v632_v1, %v2067_v63 }
 0x154   :  { %v497_v19 = vmax.f32 %v451_v11, 0.0  ;;  %v499_v20 = vmax.f32 %v492_v12, 0.0  ;;  %v1386_v8 = vrot.slane %v1371_v2, %v2067_v63  ;;  %v1366_v9 = vpop.permute.xlu0 %1365  ;;  %v1390_v12 = vrot.slane %v1375_v3, %v2067_v63 }
 0x155   :  { %v2075_v21 = vpack.c.bf16 %v498_v16, %v498_v16  ;;  %v2077_v26 = vpack.c.bf16 %v496_v15, %v496_v15  ;;  %v1358_v13 = vmul.f32 %v1349_v4, %v1328_v58  ;;  %v1359_v0 = vmul.f32 %v1353_v6, %v1328_v58 }
 0x156   :  { %v501_v22 = vpack.c.bf16 %v497_v19, %v497_v19  ;;  %v503_v23 = vpack.c.bf16 %v499_v20, %v499_v20 }
 0x158   :  { %1193 = vmatprep.mubr.bf16.mxu0 %v501_v22  ;;  %1234 = vmatprep.mubr.bf16.mxu1 %v503_v23 }
 0x159   :  { %1194 = vmatmul.mubr.bf16.vlgmr.msra.gmra.mrb[4].mxu0 %v2077_v26  ;;  %1235 = vmatmul.mubr.bf16.vlgmr.msra.gmra.mrb[4].mxu1 %v2075_v21 }
 0x15a   :  { %1593 = vmatpush3.bf16.msra.mxu0 %v1820_v24  ;;  %1615 = vmatpush3.bf16.msra.mxu1 %v1821_v25  ;;  %v1396_v25 = vmul.f32 %v1390_v12, %v1366_v9 }
 0x15b   :  { %1275 = vmatprep.mubr.bf16.mxu0 %v501_v22  ;;  %1315 = vmatprep.mubr.bf16.mxu1 %v503_v23  ;;  %v1395_v23 = vmul.f32 %v1386_v8, %v1366_v9 }
 0x15c   :  { %1594 = vmatprep.subr.bf16.mxu0 %v1822_v27  ;;  %1616 = vmatprep.subr.bf16.mxu1 %v1823_v28 }
 0x15e   :  { %1595 = vmatpush3.bf16.msra.mxu0 %v1824_v29  ;;  %1617 = vmatpush3.bf16.msra.mxu1 %v1825_v30 }
 0x15f   :  { %1596 = vmatprep.subr.bf16.mxu0 %v1826_v31  ;;  %1618 = vmatprep.subr.bf16.mxu1 %v1827_v32 }
 0x162   :  { %1597 = vmatpush3.bf16.msra.mxu0 %v1828_v33  ;;  %1619 = vmatpush3.bf16.msra.mxu1 %v1829_v34 }
 0x163   :  { %1598 = vmatprep.subr.bf16.mxu0 %v1830_v35  ;;  %1620 = vmatprep.subr.bf16.mxu1 %v1831_v36 }
 0x166   :  { %1599 = vmatpush3.bf16.msra.mxu0 %v1832_v37  ;;  %1621 = vmatpush3.bf16.msra.mxu1 %v1833_v38 }
 0x167   :  { %1600 = vmatprep.subr.bf16.mxu0 %v1834_v39  ;;  %1622 = vmatprep.subr.bf16.mxu1 %v1835_v40  ;;  %v1341_v40 = vsub.s32 4, %v2055_v59 }
 0x16a   :  { %1601 = vmatpush3.bf16.msra.mxu0 %v1836_v41  ;;  %1623 = vmatpush3.bf16.msra.mxu1 %v1837_v42  ;;  %v1378_v41 = vsub.s32 5, %v2055_v59  ;;  %v1342_v42 = vrot.slane %v1324_v56, %v1341_v40 }
 0x16b   :  { %1602 = vmatprep.subr.bf16.mxu0 %v1838_v43  ;;  %1624 = vmatprep.subr.bf16.mxu1 %v1839_v44 }
 0x16c   :  { %v1379_v43 = vrot.slane %v1324_v56, %v1378_v41 }
 0x16e   :  { %1603 = vmatpush3.bf16.msra.mxu0 %v1840_v45  ;;  %1625 = vmatpush3.bf16.msra.mxu1 %v1841_v46  ;;  %v645_v46 = vrot.slane %v632_v1, %v2061_v61  ;;  %v1394_v57 = vrot.slane %v1379_v43, %v2067_v63 }
 0x16f   :  { %1604 = vmatprep.subr.bf16.mxu0 %v1842_v47  ;;  %1626 = vmatprep.subr.bf16.mxu1 %v1843_v48 }
 0x170   :  { %v1397_v56 = vmul.f32 %v1394_v57, %v1366_v9 }
 0x172   :  { %1605 = vmatpush3.bf16.msra.mxu0 %v1844_v49  ;;  %1627 = vmatpush3.bf16.msra.mxu1 %v1845_v50  ;;  %v1357_v49 = vrot.slane %v1342_v42, %v2058_v60 }
 0x173   :  { %1606 = vmatprep.subr.bf16.mxu0 %v1846_v51  ;;  %1628 = vmatprep.subr.bf16.mxu1 %v1847_v52 }
 0x174   :  { %v1360_v59 = vmul.f32 %v1357_v49, %v1328_v58 }
 0x176   :  { %1607 = vmatpush3.bf16.msra.mxu0 %v1848_v53  ;;  %1629 = vmatpush3.bf16.msra.mxu1 %v1849_v54 }
 0x179   :  { %1276 = vmatmul.mubr.bf16.vlgmr.msra.gmra.mrb[8].mxu0 %v2077_v26  ;;  %1316 = vmatmul.mubr.bf16.vlgmr.msra.gmra.mrb[8].mxu1 %v2075_v21  ;;  %v1404_v26 = vld [vmem:[%s2124_s7] sm:$0x7]  ;;  %s1637_s7 = spop %1636 }
 0x17a   :  { %v1409_v30 = vrot.slane %v1404_v26, %v2058_v60  ;;  %v1413_v32 = vrot.slane %v1404_v26, %v2067_v63  ;;  %v1417_v1 = vrot.slane %v1404_v26, %v2061_v61  ;;  %v1434_v8 = vstv %s1637_s7 }
 0x22c   :  { %v1195_v10 = vpop.f32.mrb[4].mxu0  ;;  %v1236_v11 = vpop.f32.mrb[4].mxu1 }
 0x22d   :  { %v1196_v14 = vadd.f32 %v1195_v10, %v637_v5  ;;  %v1197_v15 = vpop.f32.mrb[5].mxu0  ;;  %v1238_v16 = vpop.f32.mrb[5].mxu1 }
 0x22e   :  { %v1198_v17 = vadd.f32 %v1197_v15, %v641_v7  ;;  %v1199_v18 = vpop.f32.mrb[6].mxu0  ;;  %v1240_v19 = vpop.f32.mrb[6].mxu1 }
 0x22f   :  { %v1237_v20 = vadd.f32 %v1236_v11, %v1196_v14  ;;  %v1200_v21 = vpop.f32.mrb[7].mxu0  ;;  %v1241_v22 = vpop.f32.mrb[7].mxu1 }
 0x230   :  { %v1239_v24 = vadd.f32 %v1238_v16, %v1198_v17 }
 0x231   :  { %v1361_v27 = vadd.f32 %v1358_v13, %v1237_v20 }
 0x232   :  { %v1362_v28 = vadd.f32 %v1359_v0, %v1239_v24 }
 0x233   :  { %v1398_v29 = vadd.f32 %v1395_v23, %v1361_v27 }
 0x234   :  { %v1399_v31 = vadd.f32 %v1396_v25, %v1362_v28 }
 0x235   :  { %v1401_v33 = vmax.f32 %v1398_v29, 0.0 }
 0x236   :  { %v1402_v34 = vmax.f32 %v1399_v31, 0.0 }
 0x237   :  { %v1421_v35 = vmul.f32 %v1409_v30, %v1401_v33 }
 0x238   :  { %v1422_v36 = vmul.f32 %v1413_v32, %v1402_v34 }
 0x239   :  { %v1425_v37 = vsel %vm1424_vm1, %v1421_v35, 0.0 }
 0x23a   :  { %v1426_v38 = vsel %vm1424_vm1, %v1422_v36, 0.0 }
 0x23b   :  { %v1427_v39 = vadd.f32 %v1426_v38, %v1425_v37 }
 0x24c   :  { %v1608_v44 = vpop.f32.mrb[8].mxu0  ;;  %v1630_v45 = vpop.f32.mrb[8].mxu1 }
 0x24d   :  { %v1609_v47 = vpop.f32.mrb[9].mxu0  ;;  %v1631_v48 = vpop.f32.mrb[9].mxu1 }
 0x24e   :  { %v1610_v50 = vadd.f32 %v1609_v47, %v1608_v44  ;;  %v1632_v51 = vadd.f32 %v1631_v48, %v1630_v45  ;;  %v1611_v52 = vpop.f32.mrb[10].mxu0  ;;  %v1633_v53 = vpop.f32.mrb[10].mxu1 }
 0x24f   :  { %v1612_v54 = vpop.f32.mrb[11].mxu0  ;;  %v1634_v55 = vpop.f32.mrb[11].mxu1 }
 0x250   :  { %v1278_v62 = vadd.f32 %v1610_v50, %v645_v46 }
 0x252   :  { %v1318_v2 = vadd.f32 %v1632_v51, %v1278_v62 }
 0x254   :  { %v1363_v3 = vadd.f32 %v1360_v59, %v1318_v2 }
 0x256   :  { %v1400_v4 = vadd.f32 %v1397_v56, %v1363_v3 }
 0x258   :  { %v1403_v5 = vmax.f32 %v1400_v4, 0.0 }
 0x25a   :  { %v1423_v6 = vmul.f32 %v1417_v1, %v1403_v5 }
 0x25c   :  { %v1428_v60 = vsel %vm1424_vm1, %v1423_v6, 0.0 }
 0x25d   :  { %v1429_v7 = vadd.f32 %v1428_v60, %v1427_v39 }
 0x25f   :  { %1430 = vadd.xlane.f32.xlu1 %v1429_v7 }
 0x2ec   :  { %v1431_v10 = vpop.xlane.xlu1 %1430 }
 0x2ed   :  { %v1435_v11 = vadd.f32 %v1434_v8, %v1431_v10 }
 0x2ef   :  { %1437 = vst.msk [vmem:[%s2126_s9] sm:$0x3] %vm1436_vm2, %v1435_v11 }
 0x2f0   :  { %1442 = vsyncpa [#allocation4], 1 }
 0x2f1   :  { %1443 = vsyncpa [#allocation6], 1 }
 0x2f2   :  { %1444 = vsyncpa [#allocation9], 1 }

</bundles_post_ra>
